<compile_context>
chip_gen: v6e
topology: v6e:2x2x1
jax: 0.10.0
libtpu: 0.0.40
codegen_flags: <defaults>
</compile_context>

<pallas_src>
import math
import jax
import jax.numpy as jnp
from jax.experimental import pallas as pl
from jax.experimental import pallas as _pl_unused  # noqa: F401
from jax.experimental.pallas import tpu as pltpu   # noqa: F401  (imported per convention)

# ---------------- model hyper-parameters (small, deterministic) ----------------
B = 2           # batch
S = 8           # sequence length
D = 32          # model dim ("size")
H = 4           # attention heads
DK = D // H     # per-head dim
DFF = 64        # feed-forward hidden dim
EPS = 1e-6      # LayerNorm eps (matches the torch module)
BS = B * S      # flattened tokens
LANES = 128     # lane padding of the parameter slab

# ---- packed parameter-slab row offsets (all rows padded to 128 lanes, f32) ----
R_WQKV = 0                  # rows [0,32):    [wq*scale | wk | wv | 0]      (32,128)
R_WO   = R_WQKV + D         # rows [32,64):   wo in lanes 0:32              (32,128)
R_W1   = R_WO + D           # rows [64,96):   w1 in lanes 0:64              (32,128)
R_W2   = R_W1 + D           # rows [96,224):  w2 in [0:64, 0:32], rest 0    (128,128)
R_HM   = R_W2 + 2 * DFF     # rows [224,288): head-block 0/1 mask, lanes 0:32
R_VEC  = R_HM + H * BS      # rows [288,296): small vectors (see pack_params)
N_ROWS = R_VEC + 8


def _layernorm(v, a, b):
    """Matches the torch LayerNorm: a*(x-mean)/(std+eps)+b, unbiased (N-1) std."""
    mean = jnp.mean(v, axis=-1, keepdims=True)
    var = jnp.sum((v - mean) ** 2, axis=-1, keepdims=True) / (D - 1)
    std = jnp.sqrt(var)
    return a * (v - mean) / (std + EPS) + b


def encoder_layer_kernel(x_ref, bias_ref, slab_ref, o_ref):
    x = x_ref[...]               # (BS, D)    flattened tokens
    bias_all = bias_ref[...]     # (BS, H*BS) additive mask bias, pre-tiled per head

    # ---- static views into the packed parameter slab (each read exactly once) ----
    wqkv = slab_ref[R_WQKV:R_WQKV + D, :]            # (D, 128): [wq*s | wk | wv | 0]
    wo   = slab_ref[R_WO:R_WO + D, 0:D]              # (D, D)
    w1   = slab_ref[R_W1:R_W1 + D, :]                # (D, 128): [w1 | 0]
    w2   = slab_ref[R_W2:R_W2 + 2 * DFF, 0:D]        # (2*DFF, D): rows DFF.. are 0
    hm   = slab_ref[R_HM:R_HM + H * BS, 0:D]         # (H*BS, D) head-block 0/1 mask
    bqkv = slab_ref[R_VEC + 0:R_VEC + 1, :]          # (1, 128): [bq*s | bk | bv | 0]
    b1   = slab_ref[R_VEC + 1:R_VEC + 2, :]          # (1, 128): [b1 | 0]
    bo   = slab_ref[R_VEC + 2:R_VEC + 3, 0:D]        # (1, D)
    b2   = slab_ref[R_VEC + 3:R_VEC + 4, 0:D]        # (1, D)
    ln1_a = slab_ref[R_VEC + 4:R_VEC + 5, 0:D]
    ln1_b = slab_ref[R_VEC + 5:R_VEC + 6, 0:D]
    ln2_a = slab_ref[R_VEC + 6:R_VEC + 7, 0:D]
    ln2_b = slab_ref[R_VEC + 7:R_VEC + 8, 0:D]

    # ---------- sublayer 0: pre-LN + fused multi-head self-attention ----------
    xn = _layernorm(x, ln1_a, ln1_b)

    # fused QKV projection at full 128-lane width (padding lanes stay zero).
    qkv = jnp.dot(xn, wqkv, preferred_element_type=jnp.float32) + bqkv   # (BS, 128)
    q = qkv[:, 0:D]            # 1/sqrt(dk) already folded into wq/bq at pack time
    k = qkv[:, D:2 * D]
    v = qkv[:, 2 * D:3 * D]

    # Head-block-diagonal K / V: one scores matmul + one PV matmul for ALL heads.
    k_bd = jnp.tile(k, (H, 1)) * hm                  # (H*BS, D)
    v_bd = jnp.tile(v, (H, 1)) * hm                  # (H*BS, D)
    scores = jax.lax.dot_general(q, k_bd, (((1,), (1,)), ((), ())),
                                 preferred_element_type=jnp.float32)     # (BS, H*BS)

    # Softmax over keys, per (query, head) block.  Max-subtraction dropped:
    # scores are bounded and the -1e9 masked entries exp to exactly 0.
    e = jnp.exp(scores + bias_all)                                        # (BS, H*BS)
    ctx_un = jnp.dot(e, v_bd, preferred_element_type=jnp.float32)         # (BS, D)
    # Segmented denominator via the same head mask: den[:, d] = sum of e over
    # the 16 key columns of head d//DK -- already broadcast to ctx's lanes.
    den = jnp.dot(e, hm, preferred_element_type=jnp.float32)              # (BS, D)
    ctx = ctx_un * pl.reciprocal(den, approx=True)                        # (BS, D)

    attn_out = jnp.dot(ctx, wo, preferred_element_type=jnp.float32) + bo
    x1 = x + attn_out          # residual (dropout = identity, eval mode)

    # ---------- sublayer 1: pre-LN + position-wise feed-forward ----------
    xn2 = _layernorm(x1, ln2_a, ln2_b)
    h1 = jnp.maximum(
        jnp.dot(xn2, w1, preferred_element_type=jnp.float32) + b1, 0.0)   # (BS, 128)
    ff = jnp.dot(h1, w2, preferred_element_type=jnp.float32) + b2         # (BS, D)

    o_ref[...] = (x1 + ff).astype(o_ref.dtype)


# ---------------------------- host-side packing ----------------------------
def pack_params(params):
    """One-time packing of ALL static parameters into a single (296,128) slab."""
    (ln1_a, ln1_b, wq, bq, wk, bk, wv, bv, wo, bo,
     ln2_a, ln2_b, w1, b1, w2, b2) = params
    scale = 1.0 / math.sqrt(DK)

    def pad_lanes(m):
        return jnp.pad(m, ((0, 0), (0, LANES - m.shape[1])))

    wqkv = jnp.concatenate([wq * scale, wk, wv], axis=1)                  # (D, 3D)
    w2_pad = jnp.pad(w2, ((0, DFF), (0, 0)))                              # (2*DFF, D)
    head_mask = (jnp.arange(H * BS)[:, None] // BS ==
                 jnp.arange(D)[None, :] // DK).astype(jnp.float32)        # (H*BS, D)

    vec = jnp.zeros((8, LANES), jnp.float32)
    vec = vec.at[0, 0:3 * D].set(
        jnp.concatenate([bq[0] * scale, bk[0], bv[0]], axis=0))
    vec = vec.at[1, 0:DFF].set(b1[0])
    vec = vec.at[2, 0:D].set(bo[0])
    vec = vec.at[3, 0:D].set(b2[0])
    vec = vec.at[4, 0:D].set(ln1_a[0])
    vec = vec.at[5, 0:D].set(ln1_b[0])
    vec = vec.at[6, 0:D].set(ln2_a[0])
    vec = vec.at[7, 0:D].set(ln2_b[0])

    slab = jnp.concatenate([
        pad_lanes(wqkv),        # rows   0: 32
        pad_lanes(wo),          # rows  32: 64
        pad_lanes(w1),          # rows  64: 96
        pad_lanes(w2_pad),      # rows  96:224
        pad_lanes(head_mask),   # rows 224:288
        vec,                    # rows 288:296
    ], axis=0)
    assert slab.shape == (N_ROWS, LANES)
    return slab


def precompute_mask_bias(mask):
    """Additive bias (BS, H*BS): 0 where (same batch & key kept), else -1e9.
    Depends only on `mask`; computed once and reused across layers/calls."""
    key_keep = mask.reshape(1, BS) != 0.0
    row_b = jnp.arange(BS)[:, None] // S
    col_b = jnp.arange(BS)[None, :] // S
    keep = (row_b == col_b) & key_keep
    bias = jnp.where(keep, 0.0, -1e9).astype(jnp.float32)                 # (BS, BS)
    return jnp.tile(bias, (1, H))                                         # (BS, H*BS)


def encoder_layer(x, bias_all, slab):
    """x: (B, S, D) f32; bias_all: precompute_mask_bias(mask); slab: pack_params(...)."""
    x2 = x.reshape(BS, D)       # free row-major reshape
    out = pl.pallas_call(
        encoder_layer_kernel,
        out_shape=jax.ShapeDtypeStruct((BS, D), jnp.float32),
    )(x2, bias_all, slab)
    return out.reshape(B, S, D)


# ---------------- pure-JAX reference (mirrors the torch forward) ----------------
def reference(x, mask, params):
    (ln1_a, ln1_b, wq, bq, wk, bk, wv, bv, wo, bo,
     ln2_a, ln2_b, w1, b1, w2, b2) = params

    def ln(v, a, b):
        mean = jnp.mean(v, axis=-1, keepdims=True)
        var = jnp.sum((v - mean) ** 2, axis=-1, keepdims=True) / (D - 1)
        return a * (v - mean) / (jnp.sqrt(var) + EPS) + b

    xn = ln(x, ln1_a, ln1_b)
    q = xn @ wq + bq
    k = xn @ wk + bk
    v = xn @ wv + bv
    qh = q.reshape(B, S, H, DK).transpose(0, 2, 1, 3)
    kh = k.reshape(B, S, H, DK).transpose(0, 2, 1, 3)
    vh = v.reshape(B, S, H, DK).transpose(0, 2, 1, 3)
    scores = jnp.einsum("bhqd,bhkd->bhqk", qh, kh) / math.sqrt(DK)
    scores = jnp.where(mask[:, None, :, :] == 0.0, -1e9, scores)
    p = jax.nn.softmax(scores, axis=-1)
    ctx = jnp.einsum("bhqk,bhkd->bhqd", p, vh).transpose(0, 2, 1, 3).reshape(B, S, D)
    x1 = x + (ctx @ wo + bo)
    xn2 = ln(x1, ln2_a, ln2_b)
    ff = jnp.maximum(xn2 @ w1 + b1, 0.0) @ w2 + b2
    return x1 + ff


if __name__ == "__main__":
    key = jax.random.PRNGKey(0)
    keys = jax.random.split(key, 8)

    x = jax.random.normal(keys[0], (B, S, D), jnp.float32)
    mask = jnp.ones((B, 1, S), jnp.float32)
    mask = mask.at[1, 0, 6:].set(0.0)   # mask out last two key positions of batch 1

    scale = 0.1
    params = (
        jnp.ones((1, D), jnp.float32),                                    # ln1 a
        jnp.zeros((1, D), jnp.float32),                                   # ln1 b
        scale * jax.random.normal(keys[1], (D, D), jnp.float32),          # wq
        jnp.zeros((1, D), jnp.float32),                                   # bq
        scale * jax.random.normal(keys[2], (D, D), jnp.float32),          # wk
        jnp.zeros((1, D), jnp.float32),                                   # bk
        scale * jax.random.normal(keys[3], (D, D), jnp.float32),          # wv
        jnp.zeros((1, D), jnp.float32),                                   # bv
        scale * jax.random.normal(keys[4], (D, D), jnp.float32),          # wo
        jnp.zeros((1, D), jnp.float32),                                   # bo
        jnp.ones((1, D), jnp.float32),                                    # ln2 a
        jnp.zeros((1, D), jnp.float32),                                   # ln2 b
        scale * jax.random.normal(keys[5], (D, DFF), jnp.float32),        # w1
        jnp.zeros((1, DFF), jnp.float32),                                 # b1
        scale * jax.random.normal(keys[6], (DFF, D), jnp.float32),        # w2
        jnp.zeros((1, D), jnp.float32),                                   # b2
    )

    slab = jax.block_until_ready(pack_params(params))          # one-time packing
    bias_all = jax.block_until_ready(precompute_mask_bias(mask))  # one-time per mask

    out = jax.block_until_ready(encoder_layer(x, bias_all, slab))
    ref = jax.block_until_ready(reference(x, mask, params))
    assert out.shape == (B, S, D)
    assert jnp.allclose(out, ref, rtol=1e-3, atol=1e-3), "mismatch vs. JAX reference"
    print("KERNEL_OK")
</pallas_src>

<mosaic_0001>
module attributes {stable_mosaic.version = 11 : i64} {
  func.func @encoder_layer_kernel(%arg0: memref<16x32xf32, #tpu.memory_space<vmem>>, %arg1: memref<16x64xf32, #tpu.memory_space<vmem>>, %arg2: memref<296x128xf32, #tpu.memory_space<vmem>>, %arg3: memref<16x32xf32, #tpu.memory_space<vmem>>) attributes {dimension_semantics = [], scalar_prefetch = 0 : i64, scratch_operands = 0 : i64, tpu.core_type = #tpu.core_type<tc>} {
    %c0 = arith.constant 0 : index
    %c0_0 = arith.constant 0 : index
    %0 = vector.load %arg0[%c0, %c0_0] : memref<16x32xf32, #tpu.memory_space<vmem>>, vector<16x32xf32>
    %c0_1 = arith.constant 0 : index
    %c0_2 = arith.constant 0 : index
    %1 = vector.load %arg1[%c0_1, %c0_2] : memref<16x64xf32, #tpu.memory_space<vmem>>, vector<16x64xf32>
    %c0_3 = arith.constant 0 : index
    %c0_4 = arith.constant 0 : index
    %2 = vector.load %arg2[%c0_3, %c0_4] : memref<296x128xf32, #tpu.memory_space<vmem>>, vector<32x128xf32>
    %c32 = arith.constant 32 : index
    %c0_5 = arith.constant 0 : index
    %3 = vector.load %arg2[%c32, %c0_5] : memref<296x128xf32, #tpu.memory_space<vmem>>, vector<32x32xf32>
    %c64 = arith.constant 64 : index
    %c0_6 = arith.constant 0 : index
    %4 = vector.load %arg2[%c64, %c0_6] : memref<296x128xf32, #tpu.memory_space<vmem>>, vector<32x128xf32>
    %c96 = arith.constant 96 : index
    %c0_7 = arith.constant 0 : index
    %5 = vector.load %arg2[%c96, %c0_7] : memref<296x128xf32, #tpu.memory_space<vmem>>, vector<128x32xf32>
    %c224 = arith.constant 224 : index
    %c0_8 = arith.constant 0 : index
    %6 = vector.load %arg2[%c224, %c0_8] : memref<296x128xf32, #tpu.memory_space<vmem>>, vector<64x32xf32>
    %c288 = arith.constant 288 : index
    %c0_9 = arith.constant 0 : index
    %7 = vector.load %arg2[%c288, %c0_9] : memref<296x128xf32, #tpu.memory_space<vmem>>, vector<1x128xf32>
    %c289 = arith.constant 289 : index
    %c0_10 = arith.constant 0 : index
    %8 = vector.load %arg2[%c289, %c0_10] : memref<296x128xf32, #tpu.memory_space<vmem>>, vector<1x128xf32>
    %c290 = arith.constant 290 : index
    %c0_11 = arith.constant 0 : index
    %9 = vector.load %arg2[%c290, %c0_11] : memref<296x128xf32, #tpu.memory_space<vmem>>, vector<1x32xf32>
    %c291 = arith.constant 291 : index
    %c0_12 = arith.constant 0 : index
    %10 = vector.load %arg2[%c291, %c0_12] : memref<296x128xf32, #tpu.memory_space<vmem>>, vector<1x32xf32>
    %c292 = arith.constant 292 : index
    %c0_13 = arith.constant 0 : index
    %11 = vector.load %arg2[%c292, %c0_13] : memref<296x128xf32, #tpu.memory_space<vmem>>, vector<1x32xf32>
    %c293 = arith.constant 293 : index
    %c0_14 = arith.constant 0 : index
    %12 = vector.load %arg2[%c293, %c0_14] : memref<296x128xf32, #tpu.memory_space<vmem>>, vector<1x32xf32>
    %c294 = arith.constant 294 : index
    %c0_15 = arith.constant 0 : index
    %13 = vector.load %arg2[%c294, %c0_15] : memref<296x128xf32, #tpu.memory_space<vmem>>, vector<1x32xf32>
    %c295 = arith.constant 295 : index
    %c0_16 = arith.constant 0 : index
    %14 = vector.load %arg2[%c295, %c0_16] : memref<296x128xf32, #tpu.memory_space<vmem>>, vector<1x32xf32>
    %cst = arith.constant dense<0.000000e+00> : vector<16xf32>
    %15 = vector.multi_reduction <add>, %0, %cst [1] : vector<16x32xf32> to vector<16xf32>
    %16 = vector.shape_cast %15 : vector<16xf32> to vector<16x1xf32>
    %cst_17 = arith.constant 3.200000e+01 : f32
    %17 = vector.broadcast %cst_17 : f32 to vector<16x1xf32>
    %18 = arith.divf %16, %17 : vector<16x1xf32>
    %19 = vector.broadcast %18 : vector<16x1xf32> to vector<16x32xf32>
    %20 = arith.subf %0, %19 : vector<16x32xf32>
    %21 = arith.mulf %20, %20 : vector<16x32xf32>
    %cst_18 = arith.constant dense<0.000000e+00> : vector<16xf32>
    %22 = vector.multi_reduction <add>, %21, %cst_18 [1] : vector<16x32xf32> to vector<16xf32>
    %23 = vector.shape_cast %22 : vector<16xf32> to vector<16x1xf32>
    %cst_19 = arith.constant 3.100000e+01 : f32
    %24 = vector.broadcast %cst_19 : f32 to vector<16x1xf32>
    %25 = arith.divf %23, %24 : vector<16x1xf32>
    %26 = math.sqrt %25 : vector<16x1xf32>
    %27 = vector.broadcast %18 : vector<16x1xf32> to vector<16x32xf32>
    %28 = arith.subf %0, %27 : vector<16x32xf32>
    %29 = vector.broadcast %11 : vector<1x32xf32> to vector<16x32xf32>
    %30 = arith.mulf %29, %28 : vector<16x32xf32>
    %cst_20 = arith.constant 9.99999997E-7 : f32
    %31 = vector.broadcast %cst_20 : f32 to vector<16x1xf32>
    %32 = arith.addf %26, %31 : vector<16x1xf32>
    %33 = vector.broadcast %32 : vector<16x1xf32> to vector<16x32xf32>
    %34 = arith.divf %30, %33 : vector<16x32xf32>
    %35 = vector.broadcast %12 : vector<1x32xf32> to vector<16x32xf32>
    %36 = arith.addf %34, %35 : vector<16x32xf32>
    %cst_21 = arith.constant dense<0.000000e+00> : vector<16x128xf32>
    %37 = tpu.matmul %36, %2, %cst_21 {dimension_numbers = #tpu.dot_dimension_numbers<[1], [0], [0], [1], [0, 0, 1, 1], [], []>} : vector<16x32xf32>, vector<32x128xf32>, vector<16x128xf32> -> vector<16x128xf32>
    %38 = vector.broadcast %7 : vector<1x128xf32> to vector<16x128xf32>
    %39 = arith.addf %37, %38 : vector<16x128xf32>
    %40 = vector.extract_strided_slice %39 {offsets = [0, 0], sizes = [16, 32], strides = [1, 1]} : vector<16x128xf32> to vector<16x32xf32>
    %41 = vector.extract_strided_slice %39 {offsets = [0, 32], sizes = [16, 32], strides = [1, 1]} : vector<16x128xf32> to vector<16x32xf32>
    %42 = vector.extract_strided_slice %39 {offsets = [0, 64], sizes = [16, 32], strides = [1, 1]} : vector<16x128xf32> to vector<16x32xf32>
    %43 = tpu.concatenate %41, %41, %41, %41 in 0 : vector<16x32xf32>, vector<16x32xf32>, vector<16x32xf32>, vector<16x32xf32> -> vector<64x32xf32>
    %44 = arith.mulf %43, %6 : vector<64x32xf32>
    %45 = tpu.concatenate %42, %42, %42, %42 in 0 : vector<16x32xf32>, vector<16x32xf32>, vector<16x32xf32>, vector<16x32xf32> -> vector<64x32xf32>
    %46 = arith.mulf %45, %6 : vector<64x32xf32>
    %cst_22 = arith.constant dense<0.000000e+00> : vector<16x64xf32>
    %47 = tpu.matmul %40, %44, %cst_22 {dimension_numbers = #tpu.dot_dimension_numbers<[1], [1], [0], [0], [0, 0, 1, 0], [], []>} : vector<16x32xf32>, vector<64x32xf32>, vector<16x64xf32> -> vector<16x64xf32>
    %48 = arith.addf %47, %1 : vector<16x64xf32>
    %49 = math.exp %48 : vector<16x64xf32>
    %cst_23 = arith.constant dense<0.000000e+00> : vector<16x32xf32>
    %50 = tpu.matmul %49, %46, %cst_23 {dimension_numbers = #tpu.dot_dimension_numbers<[1], [0], [0], [1], [0, 0, 1, 1], [], []>} : vector<16x64xf32>, vector<64x32xf32>, vector<16x32xf32> -> vector<16x32xf32>
    %cst_24 = arith.constant dense<0.000000e+00> : vector<16x32xf32>
    %51 = tpu.matmul %49, %6, %cst_24 {dimension_numbers = #tpu.dot_dimension_numbers<[1], [0], [0], [1], [0, 0, 1, 1], [], []>} : vector<16x64xf32>, vector<64x32xf32>, vector<16x32xf32> -> vector<16x32xf32>
    %52 = tpu.reciprocal %51 {approx = true} : vector<16x32xf32> -> vector<16x32xf32>
    %53 = arith.mulf %50, %52 : vector<16x32xf32>
    %cst_25 = arith.constant dense<0.000000e+00> : vector<16x32xf32>
    %54 = tpu.matmul %53, %3, %cst_25 {dimension_numbers = #tpu.dot_dimension_numbers<[1], [0], [0], [1], [0, 0, 1, 1], [], []>} : vector<16x32xf32>, vector<32x32xf32>, vector<16x32xf32> -> vector<16x32xf32>
    %55 = vector.broadcast %9 : vector<1x32xf32> to vector<16x32xf32>
    %56 = arith.addf %54, %55 : vector<16x32xf32>
    %57 = arith.addf %0, %56 : vector<16x32xf32>
    %cst_26 = arith.constant dense<0.000000e+00> : vector<16xf32>
    %58 = vector.multi_reduction <add>, %57, %cst_26 [1] : vector<16x32xf32> to vector<16xf32>
    %59 = vector.shape_cast %58 : vector<16xf32> to vector<16x1xf32>
    %cst_27 = arith.constant 3.200000e+01 : f32
    %60 = vector.broadcast %cst_27 : f32 to vector<16x1xf32>
    %61 = arith.divf %59, %60 : vector<16x1xf32>
    %62 = vector.broadcast %61 : vector<16x1xf32> to vector<16x32xf32>
    %63 = arith.subf %57, %62 : vector<16x32xf32>
    %64 = arith.mulf %63, %63 : vector<16x32xf32>
    %cst_28 = arith.constant dense<0.000000e+00> : vector<16xf32>
    %65 = vector.multi_reduction <add>, %64, %cst_28 [1] : vector<16x32xf32> to vector<16xf32>
    %66 = vector.shape_cast %65 : vector<16xf32> to vector<16x1xf32>
    %cst_29 = arith.constant 3.100000e+01 : f32
    %67 = vector.broadcast %cst_29 : f32 to vector<16x1xf32>
    %68 = arith.divf %66, %67 : vector<16x1xf32>
    %69 = math.sqrt %68 : vector<16x1xf32>
    %70 = vector.broadcast %61 : vector<16x1xf32> to vector<16x32xf32>
    %71 = arith.subf %57, %70 : vector<16x32xf32>
    %72 = vector.broadcast %13 : vector<1x32xf32> to vector<16x32xf32>
    %73 = arith.mulf %72, %71 : vector<16x32xf32>
    %cst_30 = arith.constant 9.99999997E-7 : f32
    %74 = vector.broadcast %cst_30 : f32 to vector<16x1xf32>
    %75 = arith.addf %69, %74 : vector<16x1xf32>
    %76 = vector.broadcast %75 : vector<16x1xf32> to vector<16x32xf32>
    %77 = arith.divf %73, %76 : vector<16x32xf32>
    %78 = vector.broadcast %14 : vector<1x32xf32> to vector<16x32xf32>
    %79 = arith.addf %77, %78 : vector<16x32xf32>
    %cst_31 = arith.constant dense<0.000000e+00> : vector<16x128xf32>
    %80 = tpu.matmul %79, %4, %cst_31 {dimension_numbers = #tpu.dot_dimension_numbers<[1], [0], [0], [1], [0, 0, 1, 1], [], []>} : vector<16x32xf32>, vector<32x128xf32>, vector<16x128xf32> -> vector<16x128xf32>
    %81 = vector.broadcast %8 : vector<1x128xf32> to vector<16x128xf32>
    %82 = arith.addf %80, %81 : vector<16x128xf32>
    %cst_32 = arith.constant 0.000000e+00 : f32
    %83 = vector.broadcast %cst_32 : f32 to vector<16x128xf32>
    %84 = arith.maximumf %82, %83 : vector<16x128xf32>
    %cst_33 = arith.constant dense<0.000000e+00> : vector<16x32xf32>
    %85 = tpu.matmul %84, %5, %cst_33 {dimension_numbers = #tpu.dot_dimension_numbers<[1], [0], [0], [1], [0, 0, 1, 1], [], []>} : vector<16x128xf32>, vector<128x32xf32>, vector<16x32xf32> -> vector<16x32xf32>
    %86 = vector.broadcast %10 : vector<1x32xf32> to vector<16x32xf32>
    %87 = arith.addf %85, %86 : vector<16x32xf32>
    %88 = arith.addf %57, %87 : vector<16x32xf32>
    %c0_34 = arith.constant 0 : index
    %c0_35 = arith.constant 0 : index
    %89 = vector.load %arg3[%c0_34, %c0_35] : memref<16x32xf32, #tpu.memory_space<vmem>>, vector<16x32xf32>
    tpu.vector_store %arg3[%c0_34, %c0_35], %88 {strides = array<i32>} : memref<16x32xf32, #tpu.memory_space<vmem>>, vector<16x32xf32>,
    return
  }
}

</mosaic_0001>

<bundles_post_ra>
// kernel: tpu_custom_call.1
= control target key start
LH: loop header
LB: loop body
LE: loop exit
PB: predicated region body
PF: predicated region fallthrough
CT: control target
= control target key end

     0   :  { %8 = vsyncpa [#allocation3], 0  ;;  %s1516_s0 = inlined_call_operand.hbm [shape: f32[16,32], index: 0, kind: input, shape index: {}]   ;;  %s1517_s1 = inlined_call_operand.hbm [shape: f32[16,64], index: 1, kind: input, shape index: {}]   ;;  %s1518_s2 = inlined_call_operand.hbm [shape: f32[296,128], index: 2, kind: input, shape index: {}]   ;;  %s1519_s3 = inlined_call_operand.hbm [shape: f32[16,32], index: 3, kind: output, shape index: {}]  }
   0x1   :  { %9 = vsyncpa [#allocation6], 0 }
   0x2   :  { %10 = vsyncpa [#allocation4], 0  ;;  %s1299_s12 = smov [#allocation5]   ;;  %s1300_s14 = smov [#allocation2]  }
   0x3   :  { %s28_s13 = sshll.u32 %s1299_s12, 4  ;;  %s16_s15 = sshll.u32 %s1300_s14, 4  ;;  %s29_s13 = int_to_ptr.vmem [resolvable:$true] %s28_s13  ;;  %s17_s15 = int_to_ptr.vmem [resolvable:$true] %s16_s15 }
   0x4   :  { %s1221_s16 = scalar_lea.vmem %s29_s13, 256  ;;  %p1226_p1 = scmp.lt.s32.totalorder %s29_s13, %s29_s13 }
   0x5   :  { %p1222_p0 = scmp.ne.s32.totalorder %s29_s13, %s1221_s16  ;;  %p1227_p2 = scmp.lt.s32.totalorder %s1221_s16, %s1221_s16 }
   0x7   :  { %p1228_p3 = por %p1227_p2, %p1226_p1 }
   0x9   :  { %p1229_p4 = pnand %p1228_p3, %p1222_p0 }
   0xb   :  { %1232 = shalt.err (!%p1229_p4)
}
   0xc   :  { %s1301_s17 = smov 128   ;;  %s1302_s18 = smov 8  }
   0xd   :  { %34 = dma.hbm_to_vmem [thread:$0]  %s1517_s1, 256, %s29_s13, [#allocation6], %s1301_s17, %s1301_s17, %s1302_s18  }
   0xe   :  { %s1241_s21 = scalar_lea.vmem %s17_s15, 256  ;;  %p1246_p6 = scmp.lt.s32.totalorder %s17_s15, %s17_s15 }
   0xf   :  { %p1242_p5 = scmp.ne.s32.totalorder %s17_s15, %s1241_s21  ;;  %p1247_p7 = scmp.lt.s32.totalorder %s1241_s21, %s1241_s21 }
  0x11   :  { %p1248_p8 = por %p1247_p7, %p1246_p6 }
  0x13   :  { %p1249_p9 = pnand %p1248_p8, %p1242_p5 }
  0x15   :  { %1252 = shalt.err (!%p1249_p9)
}
  0x16   :  { %22 = dma.hbm_to_vmem [thread:$0]  %s1516_s0, 256, %s17_s15, [#allocation3], %s1301_s17, %s1301_s17, %s1302_s18  }
  0x17   :  { %s1303_s24 = smov [#allocation7]  }
  0x18   :  { %s40_s25 = sshll.u32 %s1303_s24, 4  ;;  %s41_s25 = int_to_ptr.vmem [resolvable:$true] %s40_s25 }
  0x19   :  { %s1261_s26 = scalar_lea.vmem %s41_s25, 4736  ;;  %p1266_p11 = scmp.lt.s32.totalorder %s41_s25, %s41_s25 }
  0x1a   :  { %p1262_p10 = scmp.ne.s32.totalorder %s41_s25, %s1261_s26  ;;  %p1267_p12 = scmp.lt.s32.totalorder %s1261_s26, %s1261_s26 }
  0x1c   :  { %p1268_p13 = por %p1267_p12, %p1266_p11 }
  0x1e   :  { %p1269_p0 = pnand %p1268_p13, %p1262_p10 }
  0x20   :  { %1272 = shalt.err (!%p1269_p0)
}
  0x21   :  { %46 = dma.hbm_to_vmem [thread:$0]  %s1518_s2, 4736, %s41_s25, [#allocation6], %s1301_s17, %s1301_s17, %s1302_s18  }
  0x22   :  { %1293 = dma.done.wait [#allocation3], 256  }
  0x23   :  { %1294 = vsyncadd [#allocation3], 4294967040 }
  0x24   :  { %1295 = dma.done.wait [#allocation6], 4992  }
  0x25   :  { %1296 = vsyncadd [#allocation6], 4294962304  ;;  %vm104_vm0 = vcmask 261120   ;;  %v1346_v0 = vld [vmem:[#allocation2] sm:$0xff]  ;;  %v1348_v1 = vld [vmem:[#allocation2 + $0x8] sm:$0xff]  ;;  %s1304_s0 = smov 32  }
  0x26   :  { %v105_v2 = vsel %vm104_vm0, %v1346_v0, 0.0  ;;  %v108_v3 = vsel %vm104_vm0, %v1348_v1, 0.0  ;;  %v63_v14 = vld [vmem:[#allocation7 + $0x18] sm:$0xff]  ;;  %v62_v15 = vld [vmem:[#allocation7 + $0x10] sm:$0xff]  ;;  %v61_v16 = vld [vmem:[#allocation7 + $0x8] sm:$0xff]  ;;  %s1305_s2 = smov 96  }
  0x27   :  { %106 = vadd.xlane.f32.xlu0 %v105_v2  ;;  %1055 = vmatprep.subr.mxu0 %v63_v14  ;;  %v60_v17 = vld [vmem:[#allocation7] sm:$0xff]  ;;  %v1366_v18 = vld [vmem:[#allocation7 + $0x110] sm:$0xff]  ;;  %v1368_v19 = vld [vmem:[#allocation7 + $0x118] sm:$0xff]  ;;  %s1306_s28 = smov 64   ;;  %vm473_vm5 = vcmask 523264   ;;  %s1307_s29 = smov [#allocation8]  }
  0x28   :  { %1056 = vmatpush3.msra.mxu0 %v63_v14  ;;  %v1372_v20 = vld [vmem:[#allocation7 + $0x108] sm:$0xff]  ;;  %v1374_v21 = vld [vmem:[#allocation7 + $0xf8] sm:$0xff]  ;;  %v1378_v22 = vld [vmem:[#allocation7 + $0x100] sm:$0xff]  ;;  %s948_s30 = sshll.u32 %s1307_s29, 4  ;;  %s949_s30 = int_to_ptr.vmem [resolvable:$true] %s948_s30 }
  0x29   :  { %1057 = vmatprep.subr.mxu0 %v62_v15  ;;  %v1380_v23 = vld [vmem:[#allocation7 + $0xe8] sm:$0xff]  ;;  %v1384_v24 = vld [vmem:[#allocation7 + $0xf0] sm:$0xff]  ;;  %v1387_v25 = vld [vmem:[#allocation7 + $0xe0] sm:$0xff]  ;;  %s1273_s4 = scalar_lea.vmem %s949_s30, 256  ;;  %p1278_p2 = scmp.lt.s32.totalorder %s949_s30, %s949_s30 }
  0x2a   :  { %1058 = vmatpush3.msra.mxu0 %v62_v15  ;;  %v961_v42 = vld [vmem:[#allocation7 + $0x124] ss:$0 sm:$0xff]  ;;  %v962_v45 = vld [vmem:[#allocation7 + $0x125] ss:$0 sm:$0xff]  ;;  %v963_v54 = vld [vmem:[#allocation7 + $0x120] ss:$0 sm:$0xff]  ;;  %p1274_p1 = scmp.ne.s32.totalorder %s949_s30, %s1273_s4  ;;  %p1279_p3 = scmp.lt.s32.totalorder %s1273_s4, %s1273_s4 }
  0x2b   :  { %109 = vadd.xlane.f32.xlu0 %v108_v3  ;;  %1059 = vmatprep.subr.mxu0 %v61_v16 }
  0x2c   :  { %1060 = vmatpush3.msra.mxu0 %v61_v16  ;;  %p1280_p4 = por %p1279_p3, %p1278_p2 }
  0x2d   :  { %1061 = vmatprep.subr.mxu0 %v60_v17 }
  0x2e   :  { %1062 = vmatpush3.msra.mxu0 %v60_v17  ;;  %p1281_p5 = pnand %p1280_p4, %p1274_p1 }
  0x41   :  { %266 = vrot.lane.b32.xlu0 %v1368_v19, %s1304_s0 }
  0x45   :  { %258 = vrot.lane.b32.xlu0 %v1374_v21, %s1304_s0 }
  0x49   :  { %254 = vrot.lane.b32.xlu0 %v1380_v23, %s1304_s0 }
  0xb0   :  { %v107_v4 = vpop.xlane.xlu0 %106 }
  0xb1   :  { %v112_v5 = vmul.f32 0.03125, %v107_v4 }
  0xb3   :  { %v1355_v6 = vsub.f32 %v1346_v0, %v112_v5 }
  0xb4   :  { %v110_v7 = vpop.xlane.xlu0 %109 }
  0xb5   :  { %v113_v8 = vmul.f32 0.03125, %v110_v7  ;;  %v116_v9 = vmul.f32 %v1355_v6, %v1355_v6  ;;  %v145_v43 = vmul.f32 %v961_v42, %v1355_v6 }
  0xb7   :  { %v1360_v10 = vsub.f32 %v1348_v1, %v113_v8  ;;  %v118_v11 = vsel %vm104_vm0, %v116_v9, 0.0 }
  0xb8   :  { %119 = vadd.xlane.f32.xlu1 %v118_v11  ;;  %v267_v55 = vpop.permute.xlu0 %266 }
  0xb9   :  { %v117_v12 = vmul.f32 %v1360_v10, %v1360_v10  ;;  %v146_v47 = vmul.f32 %v961_v42, %v1360_v10 }
  0xbb   :  { %v121_v13 = vsel %vm104_vm0, %v117_v12, 0.0 }
  0xbc   :  { %122 = vadd.xlane.f32.xlu1 %v121_v13  ;;  %v259_v63 = vpop.permute.xlu0 %258 }
  0xc0   :  { %v255_v6 = vpop.permute.xlu0 %254 }
  0xcd   :  { %264 = vrot.lane.b32.xlu1 %v1366_v18, %s1304_s0 }
  0xd1   :  { %262 = vrot.lane.b32.xlu1 %v1372_v20, %s1304_s0 }
  0xd5   :  { %260 = vrot.lane.b32.xlu1 %v1378_v22, %s1304_s0 }
  0xd9   :  { %256 = vrot.lane.b32.xlu1 %v1384_v24, %s1304_s0 }
  0xdd   :  { %252 = vrot.lane.b32.xlu1 %v1387_v25, %s1304_s0 }
 0x141   :  { %v120_v26 = vpop.xlane.xlu1 %119 }
 0x142   :  { %v125_v27 = vmul.f32 0.032258064, %v120_v26 }
 0x144   :  { %1189 = vrsqrt.f32 %v125_v27  ;;  %vm129_vm1 = vcmp.eq.f32.partialorder %v125_v27, inf  ;;  %v132_v32 = vand.u32 2147483648, %v125_v27  ;;  %vm131_vm2 = vcmp.eq.f32.partialorder %v125_v27, 0.0 }
 0x145   :  { %v123_v28 = vpop.xlane.xlu1 %122 }
 0x146   :  { %v126_v29 = vmul.f32 0.032258064, %v123_v28 }
 0x148   :  { %1191 = vrsqrt.f32 %v126_v29  ;;  %vm136_vm3 = vcmp.eq.f32.partialorder %v126_v29, inf  ;;  %v139_v38 = vand.u32 2147483648, %v126_v29  ;;  %vm138_vm4 = vcmp.eq.f32.partialorder %v126_v29, 0.0 }
 0x149   :  { %v265_v52 = vpop.permute.xlu1 %264 }
 0x14d   :  { %v263_v53 = vpop.permute.xlu1 %262 }
 0x151   :  { %v1190_v30 = vpop.eup %1189  ;;  %v261_v58 = vpop.permute.xlu1 %260 }
 0x152   :  { %v128_v31 = vmul.f32 %v1190_v30, %v125_v27 }
 0x154   :  { %v130_v33 = vsel %vm129_vm1, %v125_v27, %v128_v31 }
 0x155   :  { %v1192_v34 = vpop.eup %1191  ;;  %v133_v35 = vsel %vm131_vm2, %v132_v32, %v130_v33  ;;  %v257_v3 = vpop.permute.xlu1 %256 }
 0x156   :  { %v135_v36 = vmul.f32 %v1192_v34, %v126_v29  ;;  %v147_v37 = vadd.f32 1e-06, %v133_v35 }
 0x158   :  { %v137_v39 = vsel %vm136_vm3, %v126_v29, %v135_v36  ;;  %1193 = vrcp.f32 %v147_v37 }
 0x159   :  { %v140_v40 = vsel %vm138_vm4, %v139_v38, %v137_v39  ;;  %v253_v8 = vpop.permute.xlu1 %252 }
 0x15a   :  { %v148_v41 = vadd.f32 1e-06, %v140_v40 }
 0x15c   :  { %1195 = vrcp.f32 %v148_v41 }
 0x165   :  { %v1194_v44 = vpop.eup %1193 }
 0x166   :  { %v150_v46 = vmul.f32 %v1194_v44, %v145_v43 }
 0x168   :  { %v157_v48 = vadd.f32 %v962_v45, %v150_v46 }
 0x169   :  { %v1196_v49 = vpop.eup %1195 }
 0x16a   :  { %v152_v50 = vmul.f32 %v1196_v49, %v146_v47  ;;  %1063 = vmatprep.mubr.msk.f32.mxu0 %vm104_vm0, %v157_v48 }
 0x16c   :  { %v158_v51 = vadd.f32 %v962_v45, %v152_v50 }
 0x16e   :  { %1064 = vmatmul.mubr.msk.f32.vlgmr.msra.gmra.mxu0 %vm104_vm0, %v158_v51  ;;  %v59_v51 = vld [vmem:[#allocation5 + $0x8] sm:$0xff] }
 0x22e   :  { %v1065_v56 = vpop.f32.mrf.mxu0 }
 0x22f   :  { %v1394_v57 = vadd.f32 %v1065_v56, %v963_v54 }
 0x230   :  { %v235_v59 = vpop.f32.mrf.mxu0 }
 0x231   :  { %v1396_v60 = vadd.f32 %v963_v54, %v235_v59  ;;  %v283_v61 = vmul.f32 %v267_v55, %v1394_v57  ;;  %v281_v2 = vmul.f32 %v263_v53, %v1394_v57  ;;  %v279_v5 = vmul.f32 %v259_v63, %v1394_v57  ;;  %v58_v53 = vld [vmem:[#allocation5] sm:$0xff] }
 0x232   :  { %v277_v9 = vmul.f32 %v255_v6, %v1394_v57 }
 0x233   :  { %1082 = vmatprep.mubr.msk.f32.mxu1 %vm104_vm0, %v1396_v60  ;;  %338 = vrot.lane.b32.xlu0 %v283_v61, %s1305_s2  ;;  %v282_v62 = vmul.f32 %v265_v52, %v1396_v60  ;;  %v280_v4 = vmul.f32 %v261_v58, %v1396_v60  ;;  %v278_v7 = vmul.f32 %v257_v3, %v1396_v60  ;;  %v980_v3 = vld [vmem:[#allocation7 + $0x122] ss:$0 sm:$0xff] }
 0x234   :  { %v276_v10 = vmul.f32 %v253_v8, %v1396_v60 }
 0x235   :  { %336 = vrot.lane.b32.xlu1 %v282_v62, %s1305_s2 }
 0x237   :  { %334 = vrot.lane.b32.xlu0 %v281_v2, %s1305_s2 }
 0x239   :  { %332 = vrot.lane.b32.xlu1 %v280_v4, %s1305_s2 }
 0x23b   :  { %330 = vrot.lane.b32.xlu0 %v279_v5, %s1305_s2 }
 0x23d   :  { %328 = vrot.lane.b32.xlu1 %v278_v7, %s1305_s2 }
 0x23f   :  { %326 = vrot.lane.b32.xlu0 %v277_v9, %s1305_s2 }
 0x241   :  { %324 = vrot.lane.b32.xlu1 %v276_v10, %s1305_s2 }
 0x243   :  { %298 = vrot.lane.b32.xlu0 %v1368_v19, %s1306_s28 }
 0x245   :  { %296 = vrot.lane.b32.xlu1 %v1366_v18, %s1306_s28 }
 0x247   :  { %294 = vrot.lane.b32.xlu0 %v1372_v20, %s1306_s28 }
 0x249   :  { %292 = vrot.lane.b32.xlu1 %v1378_v22, %s1306_s28 }
 0x24b   :  { %290 = vrot.lane.b32.xlu0 %v1374_v21, %s1306_s28 }
 0x24d   :  { %288 = vrot.lane.b32.xlu1 %v1384_v24, %s1306_s28 }
 0x24f   :  { %286 = vrot.lane.b32.xlu0 %v1380_v23, %s1306_s28 }
 0x251   :  { %284 = vrot.lane.b32.xlu1 %v1387_v25, %s1306_s28 }
 0x2a5   :  { %v339_v11 = vpop.permute.xlu0 %338 }
 0x2a6   :  { %1066 = vmatprep.subr.msk.mxu1 %vm104_vm0, %v339_v11 }
 0x2a7   :  { %v337_v12 = vpop.permute.xlu1 %336  ;;  %1067 = vmatpush3.xpose.msk.msra.mxu1 %vm104_vm0, %v339_v11 }
 0x2a8   :  { %1068 = vmatprep.subr.msk.mxu1 %vm104_vm0, %v337_v12 }
 0x2a9   :  { %v335_v13 = vpop.permute.xlu0 %334 }
 0x2ab   :  { %v333_v14 = vpop.permute.xlu1 %332  ;;  %1069 = vmatpush3.xpose.msk.msra.mxu1 %vm104_vm0, %v337_v12 }
 0x2ac   :  { %1070 = vmatprep.subr.msk.mxu1 %vm104_vm0, %v335_v13 }
 0x2ad   :  { %v331_v15 = vpop.permute.xlu0 %330 }
 0x2af   :  { %v329_v16 = vpop.permute.xlu1 %328  ;;  %1071 = vmatpush3.xpose.msk.msra.mxu1 %vm104_vm0, %v335_v13 }
 0x2b0   :  { %1072 = vmatprep.subr.msk.mxu1 %vm104_vm0, %v333_v14 }
 0x2b1   :  { %v327_v17 = vpop.permute.xlu0 %326 }
 0x2b3   :  { %v325_v26 = vpop.permute.xlu1 %324  ;;  %1073 = vmatpush3.xpose.msk.msra.mxu1 %vm104_vm0, %v333_v14 }
 0x2b4   :  { %1074 = vmatprep.subr.msk.mxu1 %vm104_vm0, %v331_v15 }
 0x2b5   :  { %v299_v27 = vpop.permute.xlu0 %298 }
 0x2b6   :  { %v315_v28 = vmul.f32 %v299_v27, %v1394_v57 }
 0x2b7   :  { %v297_v29 = vpop.permute.xlu1 %296  ;;  %1075 = vmatpush3.xpose.msk.msra.mxu1 %vm104_vm0, %v331_v15 }
 0x2b8   :  { %v314_v30 = vmul.f32 %v297_v29, %v1396_v60  ;;  %1076 = vmatprep.subr.msk.mxu1 %vm104_vm0, %v329_v16  ;;  %463 = vrot.lane.b32.xlu0 %v315_v28, %s1306_s28  ;;  %v71_v28 = vld [vmem:[#allocation7 + $0x58] sm:$0xff]  ;;  %v70_v29 = vld [vmem:[#allocation7 + $0x50] sm:$0xff] }
 0x2b9   :  { %v295_v31 = vpop.permute.xlu0 %294 }
 0x2ba   :  { %v313_v32 = vmul.f32 %v295_v31, %v1394_v57  ;;  %461 = vrot.lane.b32.xlu1 %v314_v30, %s1306_s28  ;;  %v69_v30 = vld [vmem:[#allocation7 + $0x48] sm:$0xff]  ;;  %v68_v31 = vld [vmem:[#allocation7 + $0x40] sm:$0xff] }
 0x2bb   :  { %v293_v33 = vpop.permute.xlu1 %292  ;;  %1077 = vmatpush3.xpose.msk.msra.mxu1 %vm104_vm0, %v329_v16 }
 0x2bc   :  { %v312_v34 = vmul.f32 %v293_v33, %v1396_v60  ;;  %1078 = vmatprep.subr.msk.mxu1 %vm104_vm0, %v327_v17  ;;  %459 = vrot.lane.b32.xlu0 %v313_v32, %s1306_s28  ;;  %v87_v32 = vld [vmem:[#allocation7 + $0xd8] sm:$0xff]  ;;  %v86_v33 = vld [vmem:[#allocation7 + $0xd0] sm:$0xff] }
 0x2bd   :  { %v291_v35 = vpop.permute.xlu0 %290 }
 0x2be   :  { %v311_v36 = vmul.f32 %v291_v35, %v1394_v57  ;;  %457 = vrot.lane.b32.xlu1 %v312_v34, %s1306_s28  ;;  %v85_v34 = vld [vmem:[#allocation7 + $0xc8] sm:$0xff]  ;;  %v84_v35 = vld [vmem:[#allocation7 + $0xc0] sm:$0xff] }
 0x2bf   :  { %v289_v37 = vpop.permute.xlu1 %288  ;;  %1079 = vmatpush3.xpose.msk.msra.mxu1 %vm104_vm0, %v327_v17 }
 0x2c0   :  { %v310_v38 = vmul.f32 %v289_v37, %v1396_v60  ;;  %1080 = vmatprep.subr.msk.mxu1 %vm104_vm0, %v325_v26  ;;  %455 = vrot.lane.b32.xlu0 %v311_v36, %s1306_s28  ;;  %v83_v36 = vld [vmem:[#allocation7 + $0xb8] sm:$0xff]  ;;  %v82_v37 = vld [vmem:[#allocation7 + $0xb0] sm:$0xff] }
 0x2c1   :  { %v287_v39 = vpop.permute.xlu0 %286 }
 0x2c2   :  { %v309_v40 = vmul.f32 %v287_v39, %v1394_v57  ;;  %453 = vrot.lane.b32.xlu1 %v310_v38, %s1306_s28  ;;  %v81_v38 = vld [vmem:[#allocation7 + $0xa8] sm:$0xff]  ;;  %v80_v39 = vld [vmem:[#allocation7 + $0xa0] sm:$0xff] }
 0x2c3   :  { %v285_v41 = vpop.permute.xlu1 %284  ;;  %1081 = vmatpush3.xpose.msk.msra.mxu1 %vm104_vm0, %v325_v26 }
 0x2c4   :  { %v308_v42 = vmul.f32 %v285_v41, %v1396_v60  ;;  %451 = vrot.lane.b32.xlu0 %v309_v40, %s1306_s28  ;;  %1145 = vmatprep.subr.mxu1 %v87_v32  ;;  %v79_v40 = vld [vmem:[#allocation7 + $0x98] sm:$0xff]  ;;  %v78_v41 = vld [vmem:[#allocation7 + $0x90] sm:$0xff] }
 0x2c6   :  { %449 = vrot.lane.b32.xlu1 %v308_v42, %s1306_s28  ;;  %1083 = vmatmul.mubr.msk.f32.vlgmr.msra.gmra.mxu1 %vm104_vm0, %v1394_v57  ;;  %v77_v42 = vld [vmem:[#allocation7 + $0x88] sm:$0xff] }
 0x2c7   :  { %1146 = vmatpush3.msra.mxu1 %v87_v32 }
 0x2c8   :  { %1147 = vmatprep.subr.mxu1 %v86_v33 }
 0x2c9   :  { %1148 = vmatpush3.msra.mxu1 %v86_v33 }
 0x2ca   :  { %1149 = vmatprep.subr.mxu1 %v85_v34 }
 0x2cb   :  { %1150 = vmatpush3.msra.mxu1 %v85_v34 }
 0x2cc   :  { %1151 = vmatprep.subr.mxu1 %v84_v35 }
 0x2cd   :  { %1152 = vmatpush3.msra.mxu1 %v84_v35 }
 0x2ce   :  { %1153 = vmatprep.subr.mxu1 %v83_v36 }
 0x2cf   :  { %1154 = vmatpush3.msra.mxu1 %v83_v36 }
 0x2d0   :  { %1155 = vmatprep.subr.mxu1 %v82_v37 }
 0x2d1   :  { %1156 = vmatpush3.msra.mxu1 %v82_v37 }
 0x2d2   :  { %1157 = vmatprep.subr.mxu1 %v81_v38 }
 0x2d3   :  { %1158 = vmatpush3.msra.mxu1 %v81_v38 }
 0x2d4   :  { %1159 = vmatprep.subr.mxu1 %v80_v39 }
 0x2d5   :  { %1160 = vmatpush3.msra.mxu1 %v80_v39 }
 0x2d6   :  { %1161 = vmatprep.subr.mxu1 %v79_v40 }
 0x2d7   :  { %1162 = vmatpush3.msra.mxu1 %v79_v40 }
 0x2d8   :  { %1163 = vmatprep.subr.mxu1 %v78_v41 }
 0x2d9   :  { %1164 = vmatpush3.msra.mxu1 %v78_v41 }
 0x2da   :  { %1165 = vmatprep.subr.mxu1 %v77_v42 }
 0x2db   :  { %1166 = vmatpush3.msra.mxu1 %v77_v42 }
 0x32a   :  { %v464_v43 = vpop.permute.xlu0 %463 }
 0x32b   :  { %1085 = vmatprep.subr.mxu0 %v464_v43 }
 0x32c   :  { %v462_v44 = vpop.permute.xlu1 %461  ;;  %1086 = vmatpush3.msra.mxu0 %v464_v43  ;;  %v76_v43 = vld [vmem:[#allocation7 + $0x80] sm:$0xff] }
 0x32d   :  { %1087 = vmatprep.subr.mxu0 %v462_v44  ;;  %1167 = vmatprep.subr.mxu1 %v76_v43 }
 0x32e   :  { %1088 = vmatpush3.msra.mxu0 %v462_v44  ;;  %v460_v45 = vpop.permute.xlu0 %459  ;;  %1168 = vmatpush3.msra.mxu1 %v76_v43 }
 0x32f   :  { %1089 = vmatprep.subr.mxu0 %v460_v45 }
 0x330   :  { %v458_v46 = vpop.permute.xlu1 %457  ;;  %1090 = vmatpush3.msra.mxu0 %v460_v45 }
 0x331   :  { %1091 = vmatprep.subr.mxu0 %v458_v46 }
 0x332   :  { %1092 = vmatpush3.msra.mxu0 %v458_v46  ;;  %v456_v47 = vpop.permute.xlu0 %455 }
 0x333   :  { %1093 = vmatprep.subr.mxu0 %v456_v47 }
 0x334   :  { %v454_v48 = vpop.permute.xlu1 %453  ;;  %1094 = vmatpush3.msra.mxu0 %v456_v47 }
 0x335   :  { %1095 = vmatprep.subr.mxu0 %v454_v48 }
 0x336   :  { %1096 = vmatpush3.msra.mxu0 %v454_v48  ;;  %v452_v49 = vpop.permute.xlu0 %451 }
 0x337   :  { %1097 = vmatprep.subr.mxu0 %v452_v49 }
 0x338   :  { %v450_v50 = vpop.permute.xlu1 %449  ;;  %1098 = vmatpush3.msra.mxu0 %v452_v49 }
 0x339   :  { %1099 = vmatprep.subr.mxu0 %v450_v50 }
 0x33a   :  { %1100 = vmatpush3.msra.mxu0 %v450_v50 }
 0x33b   :  { %1104 = vmatprep.subr.mxu0 %v1368_v19 }
 0x386   :  { %v1084_v52 = vpop.f32.mrf.mxu1 }
 0x387   :  { %v434_v54 = vadd.f32 %v1084_v52, %v59_v51 }
 0x388   :  { %v428_v55 = vpop.f32.mrf.mxu1 }
 0x389   :  { %v429_v56 = vadd.f32 %v428_v55, %v58_v53  ;;  %v439_v57 = vmul.f32 1.442695, %v434_v54 }
 0x38b   :  { %v437_v58 = vmul.f32 1.442695, %v429_v56 }
 0x38d   :  { %1197 = vpow2.f32 %v437_v58 }
 0x38e   :  { %1199 = vpow2.f32 %v439_v57 }
 0x39a   :  { %v1198_v59 = vpop.eup %1197 }
 0x39b   :  { %v1200_v60 = vpop.eup %1199  ;;  %1101 = vmatprep.mubr.msk.f32.mxu0 %vm473_vm5, %v1198_v59 }
 0x39c   :  { %1102 = vmatmul.mubr.msk.f32.vlgmr.msra.gmra.mxu0 %vm473_vm5, %v1200_v60 }
 0x39d   :  { %1105 = vmatpush3.msra.mxu0 %v1368_v19  ;;  %1120 = vmatprep.mubr.msk.f32.mxu0 %vm473_vm5, %v1198_v59  ;;  %v66_v19 = vld [vmem:[#allocation7 + $0x30] sm:$0xff] }
 0x39e   :  { %1106 = vmatprep.subr.mxu0 %v1366_v18 }
 0x39f   :  { %1107 = vmatpush3.msra.mxu0 %v1366_v18  ;;  %v67_v18 = vld [vmem:[#allocation7 + $0x38] sm:$0xff] }
 0x3a0   :  { %1108 = vmatprep.subr.mxu0 %v1372_v20 }
 0x3a1   :  { %1109 = vmatpush3.msra.mxu0 %v1372_v20  ;;  %v65_v20 = vld [vmem:[#allocation7 + $0x28] sm:$0xff] }
 0x3a2   :  { %1110 = vmatprep.subr.mxu0 %v1378_v22 }
 0x3a3   :  { %1111 = vmatpush3.msra.mxu0 %v1378_v22 }
 0x3a4   :  { %1112 = vmatprep.subr.mxu0 %v1374_v21 }
 0x3a5   :  { %1113 = vmatpush3.msra.mxu0 %v1374_v21  ;;  %v64_v21 = vld [vmem:[#allocation7 + $0x20] sm:$0xff] }
 0x3a6   :  { %1114 = vmatprep.subr.mxu0 %v1384_v24 }
 0x3a7   :  { %1115 = vmatpush3.msra.mxu0 %v1384_v24 }
 0x3a8   :  { %1116 = vmatprep.subr.mxu0 %v1380_v23 }
 0x3a9   :  { %1117 = vmatpush3.msra.mxu0 %v1380_v23 }
 0x3aa   :  { %1118 = vmatprep.subr.mxu0 %v1387_v25 }
 0x3ab   :  { %1119 = vmatpush3.msra.mxu0 %v1387_v25 }
 0x3ac   :  { %1121 = vmatmul.mubr.msk.f32.vlgmr.msra.gmra.mxu0 %vm473_vm5, %v1200_v60  ;;  %1123 = vmatprep.subr.mxu0 %v67_v18  ;;  %v983_v60 = vld [vmem:[#allocation7 + $0x126] ss:$0 sm:$0xff] }
 0x3ad   :  { %1124 = vmatpush3.msra.mxu0 %v67_v18 }
 0x3ae   :  { %1125 = vmatprep.subr.mxu0 %v66_v19 }
 0x3af   :  { %1126 = vmatpush3.msra.mxu0 %v66_v19 }
 0x3b0   :  { %1127 = vmatprep.subr.mxu0 %v65_v20 }
 0x3b1   :  { %1128 = vmatpush3.msra.mxu0 %v65_v20  ;;  %v984_v20 = vld [vmem:[#allocation7 + $0x127] ss:$0 sm:$0xff] }
 0x3b2   :  { %1129 = vmatprep.subr.mxu0 %v64_v21 }
 0x3b3   :  { %1130 = vmatpush3.msra.mxu0 %v64_v21 }
 0x3b4   :  { %1134 = vmatprep.subr.mxu0 %v71_v28 }
 0x45c   :  { %v1103_v22 = vpop.f32.mrf.mxu0 }
 0x45e   :  { %v546_v23 = vpop.f32.mrf.mxu0 }
 0x46c   :  { %v1122_v24 = vpop.f32.mrf.mxu0 }
 0x46d   :  { %1201 = vrcp.f32 %v1122_v24 }
 0x46e   :  { %v621_v61 = vpop.f32.mrf.mxu0 }
 0x46f   :  { %1203 = vrcp.f32 %v621_v61 }
 0x47a   :  { %v1202_v25 = vpop.eup %1201 }
 0x47b   :  { %v633_v2 = vmul.f32 %v1202_v25, %v1103_v22 }
 0x47c   :  { %v1204_v62 = vpop.eup %1203 }
 0x47d   :  { %v632_v63 = vmul.f32 %v1204_v62, %v546_v23  ;;  %v75_v62 = vld [vmem:[#allocation7 + $0x78] sm:$0xff] }
 0x47e   :  { %1169 = vmatprep.subr.mxu1 %v75_v62 }
 0x47f   :  { %1131 = vmatprep.mubr.msk.f32.mxu0 %vm104_vm0, %v632_v63  ;;  %1170 = vmatpush3.msra.mxu1 %v75_v62  ;;  %v74_v63 = vld [vmem:[#allocation7 + $0x70] sm:$0xff] }
 0x480   :  { %1132 = vmatmul.mubr.msk.f32.vlgmr.msra.gmra.mxu0 %vm104_vm0, %v633_v2  ;;  %1171 = vmatprep.subr.mxu1 %v74_v63  ;;  %v73_v2 = vld [vmem:[#allocation7 + $0x68] sm:$0xff] }
 0x481   :  { %1135 = vmatpush3.msra.mxu0 %v71_v28  ;;  %1172 = vmatpush3.msra.mxu1 %v74_v63 }
 0x482   :  { %1136 = vmatprep.subr.mxu0 %v70_v29  ;;  %1173 = vmatprep.subr.mxu1 %v73_v2 }
 0x483   :  { %1137 = vmatpush3.msra.mxu0 %v70_v29  ;;  %1174 = vmatpush3.msra.mxu1 %v73_v2 }
 0x484   :  { %1138 = vmatprep.subr.mxu0 %v69_v30 }
 0x485   :  { %1139 = vmatpush3.msra.mxu0 %v69_v30 }
 0x486   :  { %1140 = vmatprep.subr.mxu0 %v68_v31 }
 0x487   :  { %1141 = vmatpush3.msra.mxu0 %v68_v31 }
 0x540   :  { %v1133_v4 = vpop.f32.mrf.mxu0 }
 0x541   :  { %v716_v5 = vadd.f32 %v1133_v4, %v980_v3  ;;  %v985_v4 = vld [vmem:[#allocation7 + $0x121] ss:$0 sm:$0xff] }
 0x542   :  { %v710_v6 = vpop.f32.mrf.mxu0 }
 0x543   :  { %v1481_v7 = vadd.f32 %v716_v5, %v1348_v1  ;;  %v711_v8 = vadd.f32 %v980_v3, %v710_v6  ;;  %v72_v3 = vld [vmem:[#allocation7 + $0x60] sm:$0xff] }
 0x544   :  { %1175 = vmatprep.subr.mxu1 %v72_v3 }
 0x545   :  { %v1484_v9 = vadd.f32 %v711_v8, %v1346_v0  ;;  %v724_v10 = vsel %vm104_vm0, %v1481_v7, 0.0  ;;  %1176 = vmatpush3.msra.mxu1 %v72_v3 }
 0x546   :  { %725 = vadd.xlane.f32.xlu1 %v724_v10 }
 0x547   :  { %v721_v11 = vsel %vm104_vm0, %v1484_v9, 0.0 }
 0x548   :  { %722 = vadd.xlane.f32.xlu0 %v721_v11 }
 0x5cf   :  { %v726_v12 = vpop.xlane.xlu1 %725 }
 0x5d0   :  { %v728_v13 = vmul.f32 0.03125, %v726_v12 }
 0x5d1   :  { %v723_v14 = vpop.xlane.xlu0 %722 }
 0x5d2   :  { %v727_v15 = vmul.f32 0.03125, %v723_v14  ;;  %v1491_v16 = vsub.f32 %v1481_v7, %v728_v13  ;;  %v988_v13 = vld [vmem:[#allocation7 + $0x123] ss:$0 sm:$0xff] }
 0x5d4   :  { %v1494_v1 = vsub.f32 %v1484_v9, %v727_v15  ;;  %v732_v26 = vmul.f32 %v1491_v16, %v1491_v16  ;;  %v760_v22 = vmul.f32 %v983_v60, %v1491_v16 }
 0x5d6   :  { %v731_v0 = vmul.f32 %v1494_v1, %v1494_v1  ;;  %v736_v27 = vsel %vm104_vm0, %v732_v26, 0.0  ;;  %v759_v18 = vmul.f32 %v983_v60, %v1494_v1 }
 0x5d8   :  { %v733_v17 = vsel %vm104_vm0, %v731_v0, 0.0 }
 0x5d9   :  { %734 = vadd.xlane.f32.xlu0 %v733_v17 }
 0x5dd   :  { %737 = vadd.xlane.f32.xlu0 %v736_v27 }
 0x662   :  { %v735_v44 = vpop.xlane.xlu0 %734 }
 0x663   :  { %v739_v45 = vmul.f32 0.032258064, %v735_v44 }
 0x665   :  { %1205 = vrsqrt.f32 %v739_v45  ;;  %vm743_vm6 = vcmp.eq.f32.partialorder %v739_v45, inf  ;;  %v746_v50 = vand.u32 2147483648, %v739_v45  ;;  %vm745_vm7 = vcmp.eq.f32.partialorder %v739_v45, 0.0 }
 0x666   :  { %v738_v46 = vpop.xlane.xlu0 %737 }
 0x667   :  { %v740_v47 = vmul.f32 0.032258064, %v738_v46 }
 0x669   :  { %1207 = vrsqrt.f32 %v740_v47  ;;  %vm750_vm8 = vcmp.eq.f32.partialorder %v740_v47, inf  ;;  %v753_v56 = vand.u32 2147483648, %v740_v47  ;;  %vm752_vm9 = vcmp.eq.f32.partialorder %v740_v47, 0.0 }
 0x672   :  { %v1206_v48 = vpop.eup %1205 }
 0x673   :  { %v742_v49 = vmul.f32 %v1206_v48, %v739_v45 }
 0x675   :  { %v744_v51 = vsel %vm743_vm6, %v739_v45, %v742_v49 }
 0x676   :  { %v1208_v52 = vpop.eup %1207  ;;  %v747_v53 = vsel %vm745_vm7, %v746_v50, %v744_v51 }
 0x677   :  { %v761_v54 = vadd.f32 1e-06, %v747_v53  ;;  %v749_v55 = vmul.f32 %v1208_v52, %v740_v47 }
 0x679   :  { %1209 = vrcp.f32 %v761_v54  ;;  %v751_v57 = vsel %vm750_vm8, %v740_v47, %v749_v55 }
 0x67a   :  { %v754_v58 = vsel %vm752_vm9, %v753_v56, %v751_v57 }
 0x67b   :  { %v762_v59 = vadd.f32 1e-06, %v754_v58 }
 0x67d   :  { %1211 = vrcp.f32 %v762_v59 }
 0x686   :  { %v1210_v19 = vpop.eup %1209 }
 0x687   :  { %v764_v21 = vmul.f32 %v1210_v19, %v759_v18 }
 0x689   :  { %v771_v23 = vadd.f32 %v984_v20, %v764_v21 }
 0x68a   :  { %v1212_v24 = vpop.eup %1211 }
 0x68b   :  { %v766_v61 = vmul.f32 %v1212_v24, %v760_v22  ;;  %1142 = vmatprep.mubr.msk.f32.mxu0 %vm104_vm0, %v771_v23 }
 0x68d   :  { %v772_v25 = vadd.f32 %v984_v20, %v766_v61 }
 0x68f   :  { %1143 = vmatmul.mubr.msk.f32.vlgmr.msra.gmra.mxu0 %vm104_vm0, %v772_v25 }
 0x74f   :  { %v1144_v5 = vpop.f32.mrf.mxu0 }
 0x750   :  { %v855_v6 = vadd.f32 %v1144_v5, %v985_v4 }
 0x751   :  { %v849_v8 = vpop.f32.mrf.mxu0 }
 0x752   :  { %v850_v10 = vadd.f32 %v985_v4, %v849_v8  ;;  %v859_v12 = vmax.f32 %v855_v6, 0.0 }
 0x754   :  { %v858_v11 = vmax.f32 %v850_v10, 0.0 }
 0x756   :  { %1177 = vmatprep.mubr.f32.mxu1 %v858_v11 }
 0x757   :  { %1178 = vmatmul.mubr.f32.vlgmr.msra.gmra.mxu1 %v859_v12 }
 0x817   :  { %v1179_v14 = vpop.f32.mrf.mxu1 }
 0x818   :  { %v936_v15 = vadd.f32 %v1179_v14, %v988_v13 }
 0x819   :  { %v930_v16 = vpop.f32.mrf.mxu1 }
 0x81a   :  { %v940_v1 = vadd.f32 %v936_v15, %v1481_v7  ;;  %v931_v0 = vadd.f32 %v988_v13, %v930_v16 }
 0x81c   :  { %942 = vst.msk [vmem:[#allocation8 + $0x8] sm:$0xff] %vm104_vm0, %v940_v1  ;;  %v939_v17 = vadd.f32 %v931_v0, %v1484_v9 }
 0x81e   :  { %941 = vst.msk [vmem:[#allocation8] sm:$0xff] %vm104_vm0, %v939_v17 }
 0x81f   :  { %1284 = shalt.err (!%p1281_p5)
}
 0x820   :  { %954 = dma.vmem_to_hbm [thread:$0]  %s949_s30, 256, %s1519_s3, [#allocation4], %s1301_s17, %s1301_s17, %s1302_s18  }
 0x821   :  { %1297 = dma.done.wait [#allocation4], 256  }
 0x822   :  { %1298 = vsyncadd [#allocation4], 4294967040 }
 0x823   :  { %958 = vsyncpa [#allocation3], 1 }
 0x824   :  { %959 = vsyncpa [#allocation6], 1 }
 0x825   :  { %960 = vsyncpa [#allocation4], 1 }

</bundles_post_ra>
